<compile_context>
chip_gen: v7x
topology: tpu7x:2x2x1
jax: 0.10.0
libtpu: 0.0.40
codegen_flags: <defaults>
</compile_context>

<pallas_src>
import math
import functools

import jax
import jax.numpy as jnp
from jax import lax
from jax.experimental import pallas as pl
from jax.experimental.pallas import tpu as pltpu

LANES = 128


def _charbonnier_tile_kernel(x_ref, y_ref, out_ref, *, epsilon, chunks_per_tile,
                             chunks_total, needs_mask, unroll):
    # x_ref / y_ref: (chunks_per_tile, sub, 128) VMEM tiles in the input dtype.
    # out_ref:       (1, sub, 128) float32 lane-parallel partial sum for this tile.
    eps = jnp.float32(epsilon)
    base = pl.program_id(0) * chunks_per_tile
    acc0 = jnp.zeros(x_ref.shape[1:], jnp.float32)

    def body(c, acc):
        d = x_ref[c].astype(jnp.float32) - y_ref[c].astype(jnp.float32)
        e = jnp.sqrt(d * d + eps)
        if needs_mask:
            # Only the last grid step can contain out-of-bounds (garbage) chunks;
            # zero their contribution.  Scalar predicate -> one vselect per chunk.
            e = jnp.where(base + c < chunks_total, e, jnp.float32(0.0))
        return acc + e

    acc = lax.fori_loop(0, chunks_per_tile, body, acc0, unroll=unroll)
    out_ref[0] = acc


def charbonnier_loss(x, y, epsilon=1e-6, tile_rows=2048):
    """mean(sqrt((x - y)^2 + epsilon)) over all elements (Pallas TPU)."""
    assert x.shape == y.shape, (x.shape, y.shape)
    n_true = math.prod(x.shape)
    assert n_true > 0

    # One "chunk" = one native vreg of the input dtype.
    itemsize = jnp.dtype(x.dtype).itemsize
    sub = {4: 8, 2: 16, 1: 32}.get(itemsize, 8)
    chunk_elems = sub * LANES

    xf = jnp.ravel(x)  # free for contiguous inputs
    yf = jnp.ravel(y)

    chunks_total = n_true // chunk_elems
    n_main = chunks_total * chunk_elems

    total = jnp.zeros((), jnp.float32)

    if chunks_total > 0:
        chunks_per_tile = max(1, min(int(tile_rows) // sub, chunks_total))
        num_tiles = -(-chunks_total // chunks_per_tile)          # cdiv
        needs_mask = (chunks_total % chunks_per_tile) != 0

        if n_main == n_true:
            # No slice, no copy.
            x2 = xf.reshape(chunks_total, sub, LANES)
            y2 = yf.reshape(chunks_total, sub, LANES)
            allow_fusion = None
        else:
            # Sub-vreg ragged size: the prefix slice is unavoidable, but allow
            # XLA to fuse it into the pallas custom call instead of copying HBM.
            x2 = xf[:n_main].reshape(chunks_total, sub, LANES)
            y2 = yf[:n_main].reshape(chunks_total, sub, LANES)
            allow_fusion = [True, True]

        block_bytes = chunks_per_tile * chunk_elems * itemsize
        # 2 inputs x 2 pipeline buffers + headroom; bounded to stay legal on
        # v5e (16 MiB scoped default, 128 MiB physical) and v7x (64 MiB physical).
        vmem_limit = int(min(max(4 * block_bytes + (4 << 20), 16 << 20), 32 << 20))

        cp_kwargs = dict(
            dimension_semantics=("parallel",),   # shard tiles across v7x's 2 TCs
            vmem_limit_bytes=vmem_limit,
        )
        if allow_fusion is not None:
            cp_kwargs["allow_input_fusion"] = allow_fusion

        kernel = functools.partial(
            _charbonnier_tile_kernel,
            epsilon=float(epsilon),
            chunks_per_tile=chunks_per_tile,
            chunks_total=chunks_total,
            needs_mask=needs_mask,
            unroll=max(1, min(8, chunks_per_tile)),
        )

        partials = pl.pallas_call(
            kernel,
            out_shape=jax.ShapeDtypeStruct((num_tiles, sub, LANES), jnp.float32),
            grid_spec=pltpu.PrefetchScalarGridSpec(
                num_scalar_prefetch=0,
                grid=(num_tiles,),
                in_specs=[
                    pl.BlockSpec((chunks_per_tile, sub, LANES), lambda i: (i, 0, 0)),
                    pl.BlockSpec((chunks_per_tile, sub, LANES), lambda i: (i, 0, 0)),
                ],
                out_specs=pl.BlockSpec((1, sub, LANES), lambda i: (i, 0, 0)),
            ),
            compiler_params=pltpu.CompilerParams(**cp_kwargs),
        )(x2, y2)

        total = total + jnp.sum(partials, dtype=jnp.float32)

    # Ragged tail (< one vreg of elements): tiny, handled in plain JAX.
    tail = n_true - n_main
    if tail:
        xt = xf[n_main:].astype(jnp.float32)
        yt = yf[n_main:].astype(jnp.float32)
        d = xt - yt
        total = total + jnp.sum(jnp.sqrt(d * d + jnp.float32(epsilon)))

    # Trace-time Python-float reciprocal (avoids a few ULPs of divide error).
    return total * jnp.float32(1.0 / n_true)


if __name__ == "__main__":
    key = jax.random.PRNGKey(0)
    kx, ky = jax.random.split(key)

    def ref_loss(a, b, eps=1e-6):
        return jnp.mean(jnp.sqrt((a - b) ** 2 + jnp.float32(eps)))

    # Main case (matches the PyTorch module's expected NCHW inputs): aligned,
    # no mask, no tail.
    shape = (2, 4, 16, 16)
    X = jax.random.normal(kx, shape, dtype=jnp.float32)
    Y = jax.random.normal(ky, shape, dtype=jnp.float32)
    loss = jax.block_until_ready(jax.jit(charbonnier_loss)(X, Y))
    assert jnp.allclose(loss, ref_loss(X, Y), rtol=1e-5, atol=1e-6), (loss, ref_loss(X, Y))

    # Ragged size (not a multiple of one vreg): exercises the fused-slice path
    # plus the tiny plain-JAX tail.
    shape2 = (3, 5, 7, 11)   # 1155 elems = 1 chunk + 131-elem tail
    X2 = jax.random.normal(kx, shape2, dtype=jnp.float32)
    Y2 = jax.random.normal(ky, shape2, dtype=jnp.float32)
    loss2 = jax.block_until_ready(charbonnier_loss(X2, Y2))
    assert jnp.allclose(loss2, ref_loss(X2, Y2), rtol=1e-5, atol=1e-6), (loss2, ref_loss(X2, Y2))

    # Partial last tile: 3 chunks with 2 chunks/tile -> grid=2, in-kernel mask.
    shape3 = (3, 8, 128)
    X3 = jax.random.normal(kx, shape3, dtype=jnp.float32)
    Y3 = jax.random.normal(ky, shape3, dtype=jnp.float32)
    loss3 = jax.block_until_ready(charbonnier_loss(X3, Y3, tile_rows=16))
    assert jnp.allclose(loss3, ref_loss(X3, Y3), rtol=1e-5, atol=1e-6), (loss3, ref_loss(X3, Y3))

    print("KERNEL_OK")
</pallas_src>

<mosaic_0001>
module attributes {stable_mosaic.version = 11 : i64} {
  func.func @_charbonnier_tile_kernel(%arg0: i32, %arg1: memref<2x8x128xf32, #tpu.memory_space<vmem>>, %arg2: memref<2x8x128xf32, #tpu.memory_space<vmem>>, %arg3: memref<1x8x128xf32, #tpu.memory_space<vmem>>) attributes {dimension_semantics = [#tpu.dimension_semantics<parallel>], iteration_bounds = array<i64: 1>, scalar_prefetch = 0 : i64, scratch_operands = 0 : i64, tpu.core_type = #tpu.core_type<tc>, window_params = [{transform_indices = @transform_0, window_bounds = array<i64: 2, 8, 128>}, {transform_indices = @transform_1, window_bounds = array<i64: 2, 8, 128>}, {transform_indices = @transform_2, window_bounds = array<i64: 1, 8, 128>}]} {
    %cst = arith.constant 0.000000e+00 : f32
    %0 = vector.broadcast %cst : f32 to vector<8x128xf32>
    %cst_0 = arith.constant 9.99999997E-7 : f32
    %c0_i32 = arith.constant 0 : i32
    %1 = arith.index_cast %c0_i32 : i32 to index
    %c0 = arith.constant 0 : index
    %c0_1 = arith.constant 0 : index
    %2 = vector.load %arg1[%1, %c0, %c0_1] : memref<2x8x128xf32, #tpu.memory_space<vmem>>, vector<1x8x128xf32>
    %3 = vector.shape_cast %2 : vector<1x8x128xf32> to vector<8x128xf32>
    %4 = arith.index_cast %c0_i32 : i32 to index
    %c0_2 = arith.constant 0 : index
    %c0_3 = arith.constant 0 : index
    %5 = vector.load %arg2[%4, %c0_2, %c0_3] : memref<2x8x128xf32, #tpu.memory_space<vmem>>, vector<1x8x128xf32>
    %6 = vector.shape_cast %5 : vector<1x8x128xf32> to vector<8x128xf32>
    %7 = arith.subf %3, %6 : vector<8x128xf32>
    %8 = arith.mulf %7, %7 : vector<8x128xf32>
    %9 = vector.broadcast %cst_0 : f32 to vector<8x128xf32>
    %10 = arith.addf %8, %9 : vector<8x128xf32>
    %11 = math.sqrt %10 : vector<8x128xf32>
    %12 = arith.addf %0, %11 : vector<8x128xf32>
    %c1_i32 = arith.constant 1 : i32
    %13 = arith.index_cast %c1_i32 : i32 to index
    %c0_4 = arith.constant 0 : index
    %c0_5 = arith.constant 0 : index
    %14 = vector.load %arg1[%13, %c0_4, %c0_5] : memref<2x8x128xf32, #tpu.memory_space<vmem>>, vector<1x8x128xf32>
    %15 = vector.shape_cast %14 : vector<1x8x128xf32> to vector<8x128xf32>
    %16 = arith.index_cast %c1_i32 : i32 to index
    %c0_6 = arith.constant 0 : index
    %c0_7 = arith.constant 0 : index
    %17 = vector.load %arg2[%16, %c0_6, %c0_7] : memref<2x8x128xf32, #tpu.memory_space<vmem>>, vector<1x8x128xf32>
    %18 = vector.shape_cast %17 : vector<1x8x128xf32> to vector<8x128xf32>
    %19 = arith.subf %15, %18 : vector<8x128xf32>
    %20 = arith.mulf %19, %19 : vector<8x128xf32>
    %21 = vector.broadcast %cst_0 : f32 to vector<8x128xf32>
    %22 = arith.addf %20, %21 : vector<8x128xf32>
    %23 = math.sqrt %22 : vector<8x128xf32>
    %24 = arith.addf %12, %23 : vector<8x128xf32>
    %c2_i32 = arith.constant 2 : i32
    %c0_8 = arith.constant 0 : index
    %c0_9 = arith.constant 0 : index
    %c0_10 = arith.constant 0 : index
    %25 = vector.load %arg3[%c0_8, %c0_9, %c0_10] : memref<1x8x128xf32, #tpu.memory_space<vmem>>, vector<1x8x128xf32>
    %26 = vector.shape_cast %25 : vector<1x8x128xf32> to vector<8x128xf32>
    %27 = vector.shape_cast %24 : vector<8x128xf32> to vector<1x8x128xf32>
    tpu.vector_store %arg3[%c0_8, %c0_9, %c0_10], %27 {strides = array<i32>} : memref<1x8x128xf32, #tpu.memory_space<vmem>>, vector<1x8x128xf32>,
    return
  }
  func.func @transform_0(%arg0: i32) -> (i32, i32, i32) {
    %c0_i32 = arith.constant 0 : i32
    %c0_i32_0 = arith.constant 0 : i32
    %c0_i32_1 = arith.constant 0 : i32
    return %arg0, %c0_i32, %c0_i32_0 : i32, i32, i32
  }
  func.func @transform_1(%arg0: i32) -> (i32, i32, i32) {
    %c0_i32 = arith.constant 0 : i32
    %c0_i32_0 = arith.constant 0 : i32
    %c0_i32_1 = arith.constant 0 : i32
    return %arg0, %c0_i32, %c0_i32_0 : i32, i32, i32
  }
  func.func @transform_2(%arg0: i32) -> (i32, i32, i32) {
    %c0_i32 = arith.constant 0 : i32
    %c0_i32_0 = arith.constant 0 : i32
    %c0_i32_1 = arith.constant 0 : i32
    return %arg0, %c0_i32, %c0_i32_0 : i32, i32, i32
  }
}

</mosaic_0001>

<bundles_post_ra>
// kernel: charbonnier_loss.1
= control target key start
LH: loop header
LB: loop body
LE: loop exit
PB: predicated region body
PF: predicated region fallthrough
CT: control target
= control target key end

     0   :  { %s80_s0 = inlined_call_operand.vmem [shape: f32[2,8,128], index: 0, kind: input, shape index: {}]   ;;  %s81_s1 = inlined_call_operand.vmem [shape: f32[2,8,128], index: 1, kind: input, shape index: {}]   ;;  %s82_s2 = inlined_call_operand.vmem [shape: f32[1,8,128], index: 2, kind: output, shape index: {}]  }
   0x1   :  { %v11_v0 = vld [vmem:[%s80_s0] sm:$0xff]  ;;  %v44_v2 = vld [vmem:[%s80_s0 + $0x8] sm:$0xff] }
   0x2   :  { %v12_v1 = vld [vmem:[%s81_s1] sm:$0xff]  ;;  %v45_v4 = vld [vmem:[%s81_s1 + $0x8] sm:$0xff] }
   0x3   :  { %v13_v3 = vsub.f32 %v11_v0, %v12_v1  ;;  %v28_v5 = vsub.f32 %v44_v2, %v45_v4 }
   0x5   :  { %v14_v6 = vmul.f32 %v13_v3, %v13_v3  ;;  %v29_v7 = vmul.f32 %v28_v5, %v28_v5 }
   0x7   :  { %v15_v8 = vadd.f32 1e-06, %v14_v6  ;;  %v30_v9 = vadd.f32 1e-06, %v29_v7 }
   0x9   :  { %46 = vrsqrt.f32 %v15_v8  ;;  %vm18_vm0 = vcmp.eq.f32.partialorder %v15_v8, inf  ;;  %v21_v11 = vand.u32 2147483648, %v15_v8  ;;  %vm20_vm1 = vcmp.eq.f32.partialorder %v15_v8, 0.0 }
   0xa   :  { %48 = vrsqrt.f32 %v30_v9  ;;  %vm33_vm2 = vcmp.eq.f32.partialorder %v30_v9, inf  ;;  %v36_v14 = vand.u32 2147483648, %v30_v9  ;;  %vm35_vm3 = vcmp.eq.f32.partialorder %v30_v9, 0.0 }
  0x13   :  { %v47_v10 = vpop.eup %46 }
  0x14   :  { %v49_v12 = vpop.eup %48  ;;  %v17_v13 = vmul.f32 %v47_v10, %v15_v8 }
  0x15   :  { %v32_v15 = vmul.f32 %v49_v12, %v30_v9 }
  0x16   :  { %v19_v16 = vsel %vm18_vm0, %v15_v8, %v17_v13 }
  0x17   :  { %v22_v17 = vsel %vm20_vm1, %v21_v11, %v19_v16  ;;  %v34_v18 = vsel %vm33_vm2, %v30_v9, %v32_v15 }
  0x18   :  { %v37_v19 = vsel %vm35_vm3, %v36_v14, %v34_v18 }
  0x19   :  { %v38_v20 = vadd.f32 %v37_v19, %v22_v17 }
  0x1b   :  { %39 = vst [vmem:[%s82_s2] sm:$0xff] %v38_v20 }

</bundles_post_ra>
